<compile_context>
chip_gen: v7x
topology: tpu7x:2x2x1
jax: 0.10.0
libtpu: 0.0.40
codegen_flags: <defaults>
</compile_context>

<pallas_src>
import functools

import jax
import jax.numpy as jnp
import numpy as np
from jax.experimental import pallas as pl
from jax.experimental.pallas import tpu as pltpu


def aconv_forward(x_nchw, weight, bias, *, th=64, out_dtype=None):
    """AConv forward: Conv2d(ks x ks, stride=(2, 1), padding=ks//2) + ELU.

    x_nchw: (N, C_in, H, W)       float32
    weight: (C_out, C_in, KH, KW) (PyTorch Conv2d layout, KH/KW odd)
    bias:   (C_out,)
    returns (N, C_out, H_out, W)  NCHW, dtype `out_dtype` (default: x dtype)
    """
    N, C_in, H, W = x_nchw.shape
    C_out, C_in_w, KH, KW = weight.shape
    assert C_in_w == C_in
    assert KH % 2 == 1 and KW % 2 == 1, "AConv requires an odd kernel size"
    # TODO(synk): only the module's default stride (2, 1) is implemented here.
    sh, sw = 2, 1
    ph, pw = KH // 2, KW // 2
    H_out = (H + 2 * ph - KH) // sh + 1
    W_out = (W + 2 * pw - KW) // sw + 1          # == W
    W_pad = W + 2 * pw
    out_dtype = x_nchw.dtype if out_dtype is None else jnp.dtype(out_dtype)
    out_isize = jnp.dtype(out_dtype).itemsize
    cdt = jnp.bfloat16

    # ---- tile sizing (output rows per grid step; multiple of 8) ----------------------
    halo = (KH - 1) // 2 + 1                     # extra rows per flat tile (kh shift + kw slack)
    th_eff = min(max(8, ((th + 7) // 8) * 8), ((H_out + 7) // 8) * 8)

    def _tile_vmem_bytes(t):
        lt, lc = (t + halo) * W_pad, t * W_pad
        in_b = 2 * (2 * C_in * lt * 2)                     # even+odd blocks, double-buffered, bf16
        out_b = 2 * C_out * lc * out_isize                 # double-buffered output blocks
        tmp_b = C_out * lc * 4 + 2 * C_in * lt * 2         # f32 accumulator + live slices (approx)
        w_b = 2 * (KH * KW * C_out * C_in * 2 + C_out * 4)
        return in_b + out_b + tmp_b + w_b

    while th_eff > 8 and _tile_vmem_bytes(th_eff) > 14 * 2**20:   # keep v7x (64 MiB VMEM) safe
        th_eff -= 8
    n_ht = pl.cdiv(H_out, th_eff)
    H_t = n_ht * th_eff
    rpt = th_eff + halo                          # rows per flat input tile (1-2 row overlap)
    L = rpt * W_pad                              # flat input tile lane width
    Lc = th_eff * W_pad                          # flat output tile lane width

    # ---- wrapper-side layout prep (pad, even/odd split, overlapped flat tiles) -------
    x_pad = jnp.pad(x_nchw.astype(cdt), ((0, 0), (0, 0), (ph, ph), (pw, pw)))
    x_even = x_pad[:, :, 0::2, :]                # padded rows 2j   (even kh taps)
    x_odd = x_pad[:, :, 1::2, :]                 # padded rows 2j+1 (odd kh taps)

    def _flat_tiles(a):
        need = H_t + halo
        cur = a.shape[2]
        a = jnp.pad(a, ((0, 0), (0, 0), (0, need - cur), (0, 0))) if cur < need \
            else a[:, :, :need, :]
        ts = [a[:, :, i * th_eff:i * th_eff + rpt, :] for i in range(n_ht)]
        t = jnp.stack(ts, axis=1)                # (N, n_ht, C_in, rpt, W_pad)
        return t.reshape(N, n_ht, C_in, L)

    xe_t = _flat_tiles(x_even)
    xo_t = _flat_tiles(x_odd)
    w_t = jnp.transpose(weight, (2, 3, 0, 1)).astype(cdt)        # (KH, KW, C_out, C_in)
    b2 = bias.reshape(C_out, 1).astype(jnp.float32)

    # ---- kernel (one grid step = th_eff output rows x full width) ---------------------
    def kernel(xe_ref, xo_ref, w_ref, b_ref, o_ref):
        acc = None
        for kh in range(KH):                     # static unroll over the KH*KW taps
            src = xe_ref if kh % 2 == 0 else xo_ref
            for kw in range(KW):
                off = (kh // 2) * W_pad + kw                       # static lane offset
                rhs = src[0, 0, :, off:off + Lc]                   # (C_in, th*W_pad) bf16
                d = jnp.dot(w_ref[kh, kw], rhs,
                            preferred_element_type=jnp.float32)    # (C_out, th*W_pad) f32
                acc = d if acc is None else acc + d
        y = acc + b_ref[...]                                       # bias (C_out, 1), f32
        # ELU (alpha=1): x if x > 0 else exp(x) - 1 (clamp exp arg of the untaken branch).
        y = jnp.where(y > 0.0, y, jnp.exp(jnp.minimum(y, 0.0)) - 1.0)
        o_ref[0, 0] = y.astype(o_ref.dtype)                        # single lane-dense store

    in_specs = [
        pl.BlockSpec((1, 1, C_in, L), lambda n, i: (n, i, 0, 0)),
        pl.BlockSpec((1, 1, C_in, L), lambda n, i: (n, i, 0, 0)),
        pl.BlockSpec((KH, KW, C_out, C_in), lambda n, i: (0, 0, 0, 0)),
        pl.BlockSpec((C_out, 1), lambda n, i: (0, 0)),
    ]
    out_spec = pl.BlockSpec((1, 1, C_out, Lc), lambda n, i: (n, i, 0, 0))
    vmem_limit = int(min(max(32 * 2**20, 3 * _tile_vmem_bytes(th_eff)), 48 * 2**20))

    out_flat = pl.pallas_call(
        kernel,
        out_shape=jax.ShapeDtypeStruct((N, n_ht, C_out, Lc), out_dtype),
        grid=(N, n_ht),
        in_specs=in_specs,
        out_specs=out_spec,
        compiler_params=pltpu.CompilerParams(
            dimension_semantics=("parallel", "parallel"),
            vmem_limit_bytes=vmem_limit),
    )(xe_t, xo_t, w_t, b2)

    # Un-flatten to NCHW and trim padding (single fused XLA pass; also absorbs the
    # ragged-H trim, so there is no separate slice cost).
    out = out_flat.reshape(N, n_ht, C_out, th_eff, W_pad)
    out = jnp.transpose(out, (0, 2, 1, 3, 4)).reshape(N, C_out, H_t, W_pad)
    return out[:, :, :H_out, :W_out]


def _reference_aconv(x_nchw, weight, bias, stride=(2, 1)):
    """Pure-JAX reference: conv2d (NCHW) + ELU, in f32."""
    y = jax.lax.conv_general_dilated(
        x_nchw, weight,
        window_strides=stride,
        padding=[(weight.shape[2] // 2,) * 2, (weight.shape[3] // 2,) * 2],
        dimension_numbers=("NCHW", "OIHW", "NCHW"))
    y = y + bias.reshape(1, -1, 1, 1)
    return jnp.where(y > 0, y, jnp.exp(jnp.minimum(y, 0.0)) - 1.0)


if __name__ == "__main__":
    key = jax.random.PRNGKey(0)
    kx, kw_, kb = jax.random.split(key, 3)

    # Small shape matching the module defaults (single tile in H).
    N, C_in, H, W = 2, 4, 16, 16
    C_out, KS = 8, 3
    x = jax.random.normal(kx, (N, C_in, H, W), dtype=jnp.float32)
    weight = 0.1 * jax.random.normal(kw_, (C_out, C_in, KS, KS), dtype=jnp.float32)
    bias = 0.1 * jax.random.normal(kb, (C_out,), dtype=jnp.float32)

    fwd = jax.jit(aconv_forward)
    out = jax.block_until_ready(fwd(x, weight, bias))
    ref = jax.block_until_ready(_reference_aconv(x, weight, bias))
    assert out.shape == (N, C_out, H // 2, W), out.shape
    np.testing.assert_allclose(np.asarray(out), np.asarray(ref), rtol=2e-2, atol=2e-2)

    # Larger shape: exercises multi-tile H (n_ht > 1), ragged last tile (H_out = 35 is not
    # a multiple of th), the cross-tile halo rows and lane-dense widths (W >= 128).
    N2, C2_in, H2, W2 = 1, 8, 70, 200
    C2_out = 16
    x2 = jax.random.normal(kx, (N2, C2_in, H2, W2), dtype=jnp.float32)
    w2 = 0.1 * jax.random.normal(kw_, (C2_out, C2_in, KS, KS), dtype=jnp.float32)
    b2 = 0.1 * jax.random.normal(kb, (C2_out,), dtype=jnp.float32)
    fwd2 = jax.jit(functools.partial(aconv_forward, th=16))
    out2 = jax.block_until_ready(fwd2(x2, w2, b2))
    ref2 = jax.block_until_ready(_reference_aconv(x2, w2, b2))
    assert out2.shape == (N2, C2_out, H2 // 2, W2), out2.shape
    np.testing.assert_allclose(np.asarray(out2), np.asarray(ref2), rtol=2e-2, atol=2e-2)

    print("KERNEL_OK")
</pallas_src>

<mosaic_0001>
module attributes {stable_mosaic.version = 11 : i64} {
  func.func @kernel(%arg0: i32, %arg1: i32, %arg2: memref<1x1x4x180xbf16, #tpu.memory_space<vmem>>, %arg3: memref<1x1x4x180xbf16, #tpu.memory_space<vmem>>, %arg4: memref<3x3x8x4xbf16, #tpu.memory_space<vmem>>, %arg5: memref<8x1xf32, #tpu.memory_space<vmem>>, %arg6: memref<1x1x8x144xf32, #tpu.memory_space<vmem>>) attributes {dimension_semantics = [#tpu.dimension_semantics<parallel>, #tpu.dimension_semantics<parallel>], iteration_bounds = array<i64: 2, 1>, scalar_prefetch = 0 : i64, scratch_operands = 0 : i64, tpu.core_type = #tpu.core_type<tc>, window_params = [{transform_indices = @transform_0, window_bounds = array<i64: 1, 1, 4, 180>}, {transform_indices = @transform_1, window_bounds = array<i64: 1, 1, 4, 180>}, {pipeline_mode = #tpu.pipeline_mode<synchronous>, transform_indices = @transform_2, window_bounds = array<i64: 3, 3, 8, 4>}, {pipeline_mode = #tpu.pipeline_mode<synchronous>, transform_indices = @transform_3, window_bounds = array<i64: 8, 1>}, {transform_indices = @transform_4, window_bounds = array<i64: 1, 1, 8, 144>}]} {
    %c0 = arith.constant 0 : index
    %c0_0 = arith.constant 0 : index
    %c0_1 = arith.constant 0 : index
    %c0_2 = arith.constant 0 : index
    %0 = vector.load %arg2[%c0, %c0_0, %c0_1, %c0_2] : memref<1x1x4x180xbf16, #tpu.memory_space<vmem>>, vector<1x1x4x144xbf16>
    %1 = vector.shape_cast %0 : vector<1x1x4x144xbf16> to vector<4x144xbf16>
    %c0_3 = arith.constant 0 : index
    %c0_4 = arith.constant 0 : index
    %c0_5 = arith.constant 0 : index
    %c0_6 = arith.constant 0 : index
    %2 = vector.load %arg4[%c0_3, %c0_4, %c0_5, %c0_6] : memref<3x3x8x4xbf16, #tpu.memory_space<vmem>>, vector<1x1x8x4xbf16>
    %3 = vector.shape_cast %2 : vector<1x1x8x4xbf16> to vector<8x4xbf16>
    %cst = arith.constant dense<0.000000e+00> : vector<8x144xf32>
    %4 = tpu.matmul %3, %1, %cst {dimension_numbers = #tpu.dot_dimension_numbers<[1], [0], [0], [1], [0, 0, 1, 1], [], []>} : vector<8x4xbf16>, vector<4x144xbf16>, vector<8x144xf32> -> vector<8x144xf32>
    %c0_7 = arith.constant 0 : index
    %c0_8 = arith.constant 0 : index
    %c0_9 = arith.constant 0 : index
    %c1 = arith.constant 1 : index
    %5 = vector.load %arg2[%c0_7, %c0_8, %c0_9, %c1] : memref<1x1x4x180xbf16, #tpu.memory_space<vmem>>, vector<1x1x4x144xbf16>
    %6 = vector.shape_cast %5 : vector<1x1x4x144xbf16> to vector<4x144xbf16>
    %c0_10 = arith.constant 0 : index
    %c1_11 = arith.constant 1 : index
    %c0_12 = arith.constant 0 : index
    %c0_13 = arith.constant 0 : index
    %7 = vector.load %arg4[%c0_10, %c1_11, %c0_12, %c0_13] : memref<3x3x8x4xbf16, #tpu.memory_space<vmem>>, vector<1x1x8x4xbf16>
    %8 = vector.shape_cast %7 : vector<1x1x8x4xbf16> to vector<8x4xbf16>
    %cst_14 = arith.constant dense<0.000000e+00> : vector<8x144xf32>
    %9 = tpu.matmul %8, %6, %cst_14 {dimension_numbers = #tpu.dot_dimension_numbers<[1], [0], [0], [1], [0, 0, 1, 1], [], []>} : vector<8x4xbf16>, vector<4x144xbf16>, vector<8x144xf32> -> vector<8x144xf32>
    %10 = arith.addf %4, %9 : vector<8x144xf32>
    %c0_15 = arith.constant 0 : index
    %c0_16 = arith.constant 0 : index
    %c0_17 = arith.constant 0 : index
    %c2 = arith.constant 2 : index
    %11 = vector.load %arg2[%c0_15, %c0_16, %c0_17, %c2] : memref<1x1x4x180xbf16, #tpu.memory_space<vmem>>, vector<1x1x4x144xbf16>
    %12 = vector.shape_cast %11 : vector<1x1x4x144xbf16> to vector<4x144xbf16>
    %c0_18 = arith.constant 0 : index
    %c2_19 = arith.constant 2 : index
    %c0_20 = arith.constant 0 : index
    %c0_21 = arith.constant 0 : index
    %13 = vector.load %arg4[%c0_18, %c2_19, %c0_20, %c0_21] : memref<3x3x8x4xbf16, #tpu.memory_space<vmem>>, vector<1x1x8x4xbf16>
    %14 = vector.shape_cast %13 : vector<1x1x8x4xbf16> to vector<8x4xbf16>
    %cst_22 = arith.constant dense<0.000000e+00> : vector<8x144xf32>
    %15 = tpu.matmul %14, %12, %cst_22 {dimension_numbers = #tpu.dot_dimension_numbers<[1], [0], [0], [1], [0, 0, 1, 1], [], []>} : vector<8x4xbf16>, vector<4x144xbf16>, vector<8x144xf32> -> vector<8x144xf32>
    %16 = arith.addf %10, %15 : vector<8x144xf32>
    %c0_23 = arith.constant 0 : index
    %c0_24 = arith.constant 0 : index
    %c0_25 = arith.constant 0 : index
    %c0_26 = arith.constant 0 : index
    %17 = vector.load %arg3[%c0_23, %c0_24, %c0_25, %c0_26] : memref<1x1x4x180xbf16, #tpu.memory_space<vmem>>, vector<1x1x4x144xbf16>
    %18 = vector.shape_cast %17 : vector<1x1x4x144xbf16> to vector<4x144xbf16>
    %c1_27 = arith.constant 1 : index
    %c0_28 = arith.constant 0 : index
    %c0_29 = arith.constant 0 : index
    %c0_30 = arith.constant 0 : index
    %19 = vector.load %arg4[%c1_27, %c0_28, %c0_29, %c0_30] : memref<3x3x8x4xbf16, #tpu.memory_space<vmem>>, vector<1x1x8x4xbf16>
    %20 = vector.shape_cast %19 : vector<1x1x8x4xbf16> to vector<8x4xbf16>
    %cst_31 = arith.constant dense<0.000000e+00> : vector<8x144xf32>
    %21 = tpu.matmul %20, %18, %cst_31 {dimension_numbers = #tpu.dot_dimension_numbers<[1], [0], [0], [1], [0, 0, 1, 1], [], []>} : vector<8x4xbf16>, vector<4x144xbf16>, vector<8x144xf32> -> vector<8x144xf32>
    %22 = arith.addf %16, %21 : vector<8x144xf32>
    %c0_32 = arith.constant 0 : index
    %c0_33 = arith.constant 0 : index
    %c0_34 = arith.constant 0 : index
    %c1_35 = arith.constant 1 : index
    %23 = vector.load %arg3[%c0_32, %c0_33, %c0_34, %c1_35] : memref<1x1x4x180xbf16, #tpu.memory_space<vmem>>, vector<1x1x4x144xbf16>
    %24 = vector.shape_cast %23 : vector<1x1x4x144xbf16> to vector<4x144xbf16>
    %c1_36 = arith.constant 1 : index
    %c1_37 = arith.constant 1 : index
    %c0_38 = arith.constant 0 : index
    %c0_39 = arith.constant 0 : index
    %25 = vector.load %arg4[%c1_36, %c1_37, %c0_38, %c0_39] : memref<3x3x8x4xbf16, #tpu.memory_space<vmem>>, vector<1x1x8x4xbf16>
    %26 = vector.shape_cast %25 : vector<1x1x8x4xbf16> to vector<8x4xbf16>
    %cst_40 = arith.constant dense<0.000000e+00> : vector<8x144xf32>
    %27 = tpu.matmul %26, %24, %cst_40 {dimension_numbers = #tpu.dot_dimension_numbers<[1], [0], [0], [1], [0, 0, 1, 1], [], []>} : vector<8x4xbf16>, vector<4x144xbf16>, vector<8x144xf32> -> vector<8x144xf32>
    %28 = arith.addf %22, %27 : vector<8x144xf32>
    %c0_41 = arith.constant 0 : index
    %c0_42 = arith.constant 0 : index
    %c0_43 = arith.constant 0 : index
    %c2_44 = arith.constant 2 : index
    %29 = vector.load %arg3[%c0_41, %c0_42, %c0_43, %c2_44] : memref<1x1x4x180xbf16, #tpu.memory_space<vmem>>, vector<1x1x4x144xbf16>
    %30 = vector.shape_cast %29 : vector<1x1x4x144xbf16> to vector<4x144xbf16>
    %c1_45 = arith.constant 1 : index
    %c2_46 = arith.constant 2 : index
    %c0_47 = arith.constant 0 : index
    %c0_48 = arith.constant 0 : index
    %31 = vector.load %arg4[%c1_45, %c2_46, %c0_47, %c0_48] : memref<3x3x8x4xbf16, #tpu.memory_space<vmem>>, vector<1x1x8x4xbf16>
    %32 = vector.shape_cast %31 : vector<1x1x8x4xbf16> to vector<8x4xbf16>
    %cst_49 = arith.constant dense<0.000000e+00> : vector<8x144xf32>
    %33 = tpu.matmul %32, %30, %cst_49 {dimension_numbers = #tpu.dot_dimension_numbers<[1], [0], [0], [1], [0, 0, 1, 1], [], []>} : vector<8x4xbf16>, vector<4x144xbf16>, vector<8x144xf32> -> vector<8x144xf32>
    %34 = arith.addf %28, %33 : vector<8x144xf32>
    %c0_50 = arith.constant 0 : index
    %c0_51 = arith.constant 0 : index
    %c0_52 = arith.constant 0 : index
    %c18 = arith.constant 18 : index
    %35 = vector.load %arg2[%c0_50, %c0_51, %c0_52, %c18] : memref<1x1x4x180xbf16, #tpu.memory_space<vmem>>, vector<1x1x4x144xbf16>
    %36 = vector.shape_cast %35 : vector<1x1x4x144xbf16> to vector<4x144xbf16>
    %c2_53 = arith.constant 2 : index
    %c0_54 = arith.constant 0 : index
    %c0_55 = arith.constant 0 : index
    %c0_56 = arith.constant 0 : index
    %37 = vector.load %arg4[%c2_53, %c0_54, %c0_55, %c0_56] : memref<3x3x8x4xbf16, #tpu.memory_space<vmem>>, vector<1x1x8x4xbf16>
    %38 = vector.shape_cast %37 : vector<1x1x8x4xbf16> to vector<8x4xbf16>
    %cst_57 = arith.constant dense<0.000000e+00> : vector<8x144xf32>
    %39 = tpu.matmul %38, %36, %cst_57 {dimension_numbers = #tpu.dot_dimension_numbers<[1], [0], [0], [1], [0, 0, 1, 1], [], []>} : vector<8x4xbf16>, vector<4x144xbf16>, vector<8x144xf32> -> vector<8x144xf32>
    %40 = arith.addf %34, %39 : vector<8x144xf32>
    %c0_58 = arith.constant 0 : index
    %c0_59 = arith.constant 0 : index
    %c0_60 = arith.constant 0 : index
    %c19 = arith.constant 19 : index
    %41 = vector.load %arg2[%c0_58, %c0_59, %c0_60, %c19] : memref<1x1x4x180xbf16, #tpu.memory_space<vmem>>, vector<1x1x4x144xbf16>
    %42 = vector.shape_cast %41 : vector<1x1x4x144xbf16> to vector<4x144xbf16>
    %c2_61 = arith.constant 2 : index
    %c1_62 = arith.constant 1 : index
    %c0_63 = arith.constant 0 : index
    %c0_64 = arith.constant 0 : index
    %43 = vector.load %arg4[%c2_61, %c1_62, %c0_63, %c0_64] : memref<3x3x8x4xbf16, #tpu.memory_space<vmem>>, vector<1x1x8x4xbf16>
    %44 = vector.shape_cast %43 : vector<1x1x8x4xbf16> to vector<8x4xbf16>
    %cst_65 = arith.constant dense<0.000000e+00> : vector<8x144xf32>
    %45 = tpu.matmul %44, %42, %cst_65 {dimension_numbers = #tpu.dot_dimension_numbers<[1], [0], [0], [1], [0, 0, 1, 1], [], []>} : vector<8x4xbf16>, vector<4x144xbf16>, vector<8x144xf32> -> vector<8x144xf32>
    %46 = arith.addf %40, %45 : vector<8x144xf32>
    %c0_66 = arith.constant 0 : index
    %c0_67 = arith.constant 0 : index
    %c0_68 = arith.constant 0 : index
    %c20 = arith.constant 20 : index
    %47 = vector.load %arg2[%c0_66, %c0_67, %c0_68, %c20] : memref<1x1x4x180xbf16, #tpu.memory_space<vmem>>, vector<1x1x4x144xbf16>
    %48 = vector.shape_cast %47 : vector<1x1x4x144xbf16> to vector<4x144xbf16>
    %c2_69 = arith.constant 2 : index
    %c2_70 = arith.constant 2 : index
    %c0_71 = arith.constant 0 : index
    %c0_72 = arith.constant 0 : index
    %49 = vector.load %arg4[%c2_69, %c2_70, %c0_71, %c0_72] : memref<3x3x8x4xbf16, #tpu.memory_space<vmem>>, vector<1x1x8x4xbf16>
    %50 = vector.shape_cast %49 : vector<1x1x8x4xbf16> to vector<8x4xbf16>
    %cst_73 = arith.constant dense<0.000000e+00> : vector<8x144xf32>
    %51 = tpu.matmul %50, %48, %cst_73 {dimension_numbers = #tpu.dot_dimension_numbers<[1], [0], [0], [1], [0, 0, 1, 1], [], []>} : vector<8x4xbf16>, vector<4x144xbf16>, vector<8x144xf32> -> vector<8x144xf32>
    %52 = arith.addf %46, %51 : vector<8x144xf32>
    %c0_74 = arith.constant 0 : index
    %c0_75 = arith.constant 0 : index
    %53 = vector.load %arg5[%c0_74, %c0_75] : memref<8x1xf32, #tpu.memory_space<vmem>>, vector<8x1xf32>
    %54 = vector.broadcast %53 : vector<8x1xf32> to vector<8x144xf32>
    %55 = arith.addf %52, %54 : vector<8x144xf32>
    %cst_76 = arith.constant 0.000000e+00 : f32
    %56 = vector.broadcast %cst_76 : f32 to vector<8x144xf32>
    %57 = arith.cmpf ogt, %55, %56 : vector<8x144xf32>
    %cst_77 = arith.constant 0.000000e+00 : f32
    %58 = vector.broadcast %cst_77 : f32 to vector<8x144xf32>
    %59 = arith.minimumf %55, %58 : vector<8x144xf32>
    %60 = math.exp %59 : vector<8x144xf32>
    %cst_78 = arith.constant 1.000000e+00 : f32
    %61 = vector.broadcast %cst_78 : f32 to vector<8x144xf32>
    %62 = arith.subf %60, %61 : vector<8x144xf32>
    %63 = arith.select %57, %55, %62 : vector<8x144xi1>, vector<8x144xf32>
    %c0_79 = arith.constant 0 : index
    %c0_80 = arith.constant 0 : index
    %c0_81 = arith.constant 0 : index
    %c0_82 = arith.constant 0 : index
    %64 = vector.load %arg6[%c0_79, %c0_80, %c0_81, %c0_82] : memref<1x1x8x144xf32, #tpu.memory_space<vmem>>, vector<1x1x8x144xf32>
    %65 = vector.shape_cast %64 : vector<1x1x8x144xf32> to vector<8x144xf32>
    %66 = vector.shape_cast %63 : vector<8x144xf32> to vector<1x1x8x144xf32>
    tpu.vector_store %arg6[%c0_79, %c0_80, %c0_81, %c0_82], %66 {strides = array<i32>} : memref<1x1x8x144xf32, #tpu.memory_space<vmem>>, vector<1x1x8x144xf32>,
    return
  }
  func.func @transform_0(%arg0: i32, %arg1: i32) -> (i32, i32, i32, i32) {
    %c0_i32 = arith.constant 0 : i32
    %c0_i32_0 = arith.constant 0 : i32
    %c0_i32_1 = arith.constant 0 : i32
    return %arg0, %arg1, %c0_i32, %c0_i32_0 : i32, i32, i32, i32
  }
  func.func @transform_1(%arg0: i32, %arg1: i32) -> (i32, i32, i32, i32) {
    %c0_i32 = arith.constant 0 : i32
    %c0_i32_0 = arith.constant 0 : i32
    %c0_i32_1 = arith.constant 0 : i32
    return %arg0, %arg1, %c0_i32, %c0_i32_0 : i32, i32, i32, i32
  }
  func.func @transform_2(%arg0: i32, %arg1: i32) -> (i32, i32, i32, i32) {
    %c0_i32 = arith.constant 0 : i32
    %c0_i32_0 = arith.constant 0 : i32
    %c0_i32_1 = arith.constant 0 : i32
    %c0_i32_2 = arith.constant 0 : i32
    %c0_i32_3 = arith.constant 0 : i32
    return %c0_i32, %c0_i32_0, %c0_i32_1, %c0_i32_2 : i32, i32, i32, i32
  }
  func.func @transform_3(%arg0: i32, %arg1: i32) -> (i32, i32) {
    %c0_i32 = arith.constant 0 : i32
    %c0_i32_0 = arith.constant 0 : i32
    %c0_i32_1 = arith.constant 0 : i32
    return %c0_i32, %c0_i32_0 : i32, i32
  }
  func.func @transform_4(%arg0: i32, %arg1: i32) -> (i32, i32, i32, i32) {
    %c0_i32 = arith.constant 0 : i32
    %c0_i32_0 = arith.constant 0 : i32
    %c0_i32_1 = arith.constant 0 : i32
    return %arg0, %arg1, %c0_i32, %c0_i32_0 : i32, i32, i32, i32
  }
}

</mosaic_0001>

<bundles_post_ra>
// kernel: aconv_forward.1
= control target key start
LH: loop header
LB: loop body
LE: loop exit
PB: predicated region body
PF: predicated region fallthrough
CT: control target
= control target key end

     0   :  { %s1150_s15 = smov 0   ;;  %s1152_s16 = smov 0   ;;  %s1261_s0 = inlined_call_operand.vmem [shape: bf16[2,1,4,180], index: 0, kind: input, shape index: {}]   ;;  %s1262_s1 = inlined_call_operand.vmem [shape: bf16[2,1,4,180], index: 1, kind: input, shape index: {}]   ;;  %s1263_s2 = inlined_call_operand.vmem [shape: bf16[3,3,8,4], index: 2, kind: input, shape index: {}]   ;;  %s1264_s3 = inlined_call_operand.vmem [shape: f32[8,1], index: 3, kind: input, shape index: {}]   ;;  %s1265_s4 = inlined_call_operand.vmem [shape: f32[2,1,8,144], index: 4, kind: output, shape index: {}]  }
   0x1   :  { %s1154_s17 = smov 0  }
   0x2 LB: > { %s26_s18 = sadd.s32 1, %s1113_s16  ;;  %p1012_p0 = scmp.ge.s32.totalorder %s1117_s17, 1  ;;  %s1117_s17 = sphi %s1154_s17, %s14_s17   ;;  %s1113_s16 = sphi %s1152_s16, %s1267_s16   ;;  %s1109_s15 = sphi %s1150_s15, %s1266_s15  }
   0x3   : > { %p28_p1 = scmp.ge.s32.totalorder %s26_s18, 2  ;;  %p198_p2 = scmp.lt.s32.totalorder %s1117_s17, 3 }
   0x5   : > { %s1269_s18 = smov (%p28_p1, %s26_s18), 0  ;;  %p199_p3 = pnand %p1012_p0, %p198_p2 }
   0x6   : > { %p241_p4 = scmp.lt.s32.totalorder (!%p199_p3), %s1109_s15, 1  ;;  %v1119_v0 = vmov (!%p199_p3), 0   ;;  %vm292_vm0 = vcmask (!%p199_p3), 1041408   ;;  %s1120_s26 = smov (!%p199_p3), 126   ;;  %vm288_vm1 = vcmask (!%p199_p3), 31744   ;;  %v872_v9 = vld [vmem:[%s1264_s3] sm:$0xff] (!%p199_p3) }
   0x7   : > { %202 = sbr.rel (%p199_p3) target bundleno = 410 (0x19a), region = 36  ;;  %331 = vmatprep.mubr.bf16.mxu0 (!%p199_p3), %v1119_v0  ;;  %381 = vmatprep.mubr.bf16.mxu1 (!%p199_p3), %v1119_v0  ;;  %s1121_s27 = smov (!%p199_p3), 127   ;;  %v270_v6 = vld [vmem:[%s1263_s2] sm:$0xf] (!%p199_p3)  ;;  %v1029_v8 = vld [vmem:[%s1263_s2 + $0xc] sm:$0xf] (!%p199_p3) }
   0x8   : > { %1090 = vset.pattern.permute.xlu0 (!%p199_p3), %v1119_v0  ;;  %s1122_s6 = smov (!%p199_p3), 110   ;;  %s1123_s7 = smov (!%p199_p3), 109   ;;  %vm406_vm2 = vcmask (!%p199_p3), 1031168   ;;  %vm286_vm3 = vcmask (!%p199_p3), 1039360   ;;  %v1019_v17 = vld [vmem:[%s1263_s2 + $0x4] sm:$0xf] (!%p199_p3) }
   0x9   : > { %s1124_s8 = smov (!%p199_p3), 108   ;;  %v1025_v26 = vld [vmem:[%s1263_s2 + $0x8] sm:$0xf] (!%p199_p3)  ;;  %v1037_v27 = vld [vmem:[%s1263_s2 + $0x14] sm:$0xf] (!%p199_p3)  ;;  %vm678_vm4 = vcmask (!%p199_p3), 900096  }
   0xa   : > { %vm748_vm5 = vcmask (!%p199_p3), 891904   ;;  %v1033_v36 = vld [vmem:[%s1263_s2 + $0x10] sm:$0xf] (!%p199_p3)  ;;  %v1045_v37 = vld [vmem:[%s1263_s2 + $0x1c] sm:$0xf] (!%p199_p3)  ;;  %vm818_vm6 = vcmask (!%p199_p3), 883712  }
   0xb   : > { %v1041_v42 = vld [vmem:[%s1263_s2 + $0x18] sm:$0xf] (!%p199_p3)  ;;  %v1049_v44 = vld [vmem:[%s1263_s2 + $0x20] sm:$0xf] (!%p199_p3)  ;;  %vm893_vm7 = vcmask (!%p199_p3), 130048  }
   0xe   : > { %s1271_s15 = smov (!%p241_p4, %s1109_s15), 1 }
   0xf   : > { %s1057_s19 = sshll.u32 %s1271_s15, 2  ;;  %s1059_s29 = sshll.u32 %s1271_s15, 4 }
  0x10   : > { %s249_s22 = scalar_lea.vmem %s1261_s0, %s1057_s19  ;;  %s258_s25 = scalar_lea.vmem %s1262_s1, %s1057_s19 }
  0x11   : > { %v1026_v1 = vld.sshfl [vmem:[%s249_s22] sm:$0x33 pattern:$0x76325410] }
  0x12   : > { %402 = vrot.lane.b32.xlu1 %v1026_v1, %s1120_s26  ;;  %v401_v2 = vcombine.high %v1026_v1, %v1026_v1  ;;  %282 = vrot.lane.b32.xlu0 %v1026_v1, %s1121_s27  ;;  %v1034_v3 = vld.sshfl [vmem:[%s258_s25] sm:$0x33 pattern:$0x76325410]  ;;  %v344_v4 = vsel %vm292_vm0, %v1026_v1, 0 }
  0x13   : > { %v535_v5 = vcombine.high %v1034_v3, %v1034_v3  ;;  %v476_v7 = vsel %vm292_vm0, %v1034_v3, 0 }
  0x14   : > { %1023 = vmatprep.subr.msk.bf16.mxu1 %vm292_vm0, %v401_v2 }
  0x15   : > { %350 = vmatpush1.bf16.msra.mxu1 %v344_v4 }
  0x16   : > { %404 = vrot.lane.b32.xlu1 %v401_v2, %s1120_s26  ;;  %284 = vrot.lane.b32.xlu0 %v401_v2, %s1121_s27 }
  0x17   : > { %1031 = vmatprep.subr.msk.bf16.mxu1 %vm292_vm0, %v535_v5 }
  0x18   : > { %1024 = vmatmul.mubr.msk.bf16.vlgmr.msra.gmra.mrb[0].mxu1 %vm288_vm1, %v270_v6 }
  0x19   : > { %482 = vmatpush1.bf16.msra.mxu1 %v476_v7  ;;  %513 = vmatprep.mubr.bf16.mxu1 %v1119_v0 }
  0x1a   : > { %538 = vrot.lane.b32.xlu1 %v535_v5, %s1121_s27  ;;  %536 = vrot.lane.b32.xlu0 %v1034_v3, %s1121_s27 }
  0x1e   : > { %607 = vrot.lane.b32.xlu1 %v535_v5, %s1120_s26  ;;  %605 = vrot.lane.b32.xlu0 %v1034_v3, %s1120_s26 }
  0x20   : > { %1032 = vmatmul.mubr.msk.bf16.vlgmr.msra.gmra.mrb[4].mxu1 %vm288_vm1, %v1029_v8 }
  0x21   : > { %651 = vmatprep.mubr.bf16.mxu1 %v1119_v0 }
  0x22   : > { %676 = vrot.lane.b32.xlu1 %v401_v2, %s1122_s6  ;;  %674 = vrot.lane.b32.xlu0 %v1026_v1, %s1122_s6  ;;  %s267_s6 = scalar_lea.vmem %s1265_s4, %s1059_s29 }
  0x26   : > { %746 = vrot.lane.b32.xlu1 %v401_v2, %s1123_s7  ;;  %744 = vrot.lane.b32.xlu0 %v1026_v1, %s1123_s7 }
  0x2a   : > { %816 = vrot.lane.b32.xlu1 %v401_v2, %s1124_s8  ;;  %814 = vrot.lane.b32.xlu0 %v1026_v1, %s1124_s8 }
  0x2e   : > { %875 = vperm.xlu0 %1090, %v872_v9  }
  0x84   : > { %v403_v10 = vpop.permute.xlu1 %402  ;;  %v283_v11 = vpop.permute.xlu0 %282 }
  0x88   : > { %v405_v12 = vpop.permute.xlu1 %404  ;;  %v285_v13 = vpop.permute.xlu0 %284 }
  0x89   : > { %v407_v14 = vsel %vm406_vm2, %v403_v10, %v405_v12  ;;  %1021 = vmatprep.subr.msk.bf16.mxu0 %vm292_vm0, %v285_v13  ;;  %v287_v15 = vsel %vm286_vm3, %v283_v11, %v285_v13 }
  0x8a   : > { %v294_v16 = vsel %vm292_vm0, %v287_v15, 0  ;;  %v412_v18 = vsel %vm292_vm0, %v407_v14, 0 }
  0x8b   : > { %300 = vmatpush1.bf16.msra.mxu0 %v294_v16 }
  0x8c   : > { %1027 = vmatprep.subr.msk.bf16.mxu0 %vm292_vm0, %v405_v12  ;;  %v539_v19 = vpop.permute.xlu1 %538  ;;  %v537_v20 = vpop.permute.xlu0 %536 }
  0x8d   : > { %v540_v23 = vsel %vm286_vm3, %v537_v20, %v539_v19 }
  0x8e   : > { %1022 = vmatmul.mubr.msk.bf16.vlgmr.msra.gmra.mrb[0].mxu0 %vm288_vm1, %v1019_v17  ;;  %v545_v28 = vsel %vm292_vm0, %v540_v23, 0 }
  0x8f   : > { %418 = vmatpush1.bf16.msra.mxu0 %v412_v18  ;;  %449 = vmatprep.mubr.bf16.mxu0 %v1119_v0 }
  0x90   : > { %1035 = vmatprep.subr.msk.bf16.mxu0 %vm292_vm0, %v539_v19  ;;  %v608_v21 = vpop.permute.xlu1 %607  ;;  %v606_v22 = vpop.permute.xlu0 %605 }
  0x91   : > { %v609_v24 = vsel %vm406_vm2, %v606_v22, %v608_v21  ;;  %1039 = vmatprep.subr.msk.bf16.mxu1 %vm292_vm0, %v608_v21 }
  0x92   : > { %v614_v25 = vsel %vm292_vm0, %v609_v24, 0 }
  0x93   : > { %620 = vmatpush1.bf16.msra.mxu1 %v614_v25 }
  0x94   : > { %v677_v29 = vpop.permute.xlu1 %676  ;;  %v675_v30 = vpop.permute.xlu0 %674 }
  0x95   : > { %v679_v33 = vsel %vm678_vm4, %v675_v30, %v677_v29 }
  0x96   : > { %1028 = vmatmul.mubr.msk.bf16.vlgmr.msra.gmra.mrb[4].mxu0 %vm288_vm1, %v1025_v26  ;;  %1040 = vmatmul.mubr.msk.bf16.vlgmr.msra.gmra.mrb[8].mxu1 %vm288_vm1, %v1037_v27  ;;  %v684_v38 = vsel %vm292_vm0, %v679_v33, 0 }
  0x97   : > { %551 = vmatpush1.bf16.msra.mxu0 %v545_v28  ;;  %582 = vmatprep.mubr.bf16.mxu0 %v1119_v0 }
  0x98   : > { %1043 = vmatprep.subr.msk.bf16.mxu0 %vm292_vm0, %v677_v29  ;;  %v747_v31 = vpop.permute.xlu1 %746  ;;  %v745_v32 = vpop.permute.xlu0 %744  ;;  %791 = vmatprep.mubr.bf16.mxu1 %v1119_v0 }
  0x99   : > { %v749_v34 = vsel %vm748_vm5, %v745_v32, %v747_v31  ;;  %1047 = vmatprep.subr.msk.bf16.mxu1 %vm292_vm0, %v747_v31 }
  0x9a   : > { %v754_v35 = vsel %vm292_vm0, %v749_v34, 0 }
  0x9b   : > { %760 = vmatpush1.bf16.msra.mxu1 %v754_v35 }
  0x9c   : > { %v817_v39 = vpop.permute.xlu1 %816  ;;  %v815_v40 = vpop.permute.xlu0 %814 }
  0x9d   : > { %v819_v41 = vsel %vm818_vm6, %v815_v40, %v817_v39 }
  0x9e   : > { %1036 = vmatmul.mubr.msk.bf16.vlgmr.msra.gmra.mrb[8].mxu0 %vm288_vm1, %v1033_v36  ;;  %1048 = vmatmul.mubr.msk.bf16.vlgmr.msra.gmra.mrb[12].mxu1 %vm288_vm1, %v1045_v37  ;;  %v824_v43 = vsel %vm292_vm0, %v819_v41, 0 }
  0x9f   : > { %690 = vmatpush1.bf16.msra.mxu0 %v684_v38  ;;  %721 = vmatprep.mubr.bf16.mxu0 %v1119_v0 }
  0xa0   : > { %1051 = vmatprep.subr.msk.bf16.mxu0 %vm292_vm0, %v817_v39 }
  0xa6   : > { %1044 = vmatmul.mubr.msk.bf16.vlgmr.msra.gmra.mrb[12].mxu0 %vm288_vm1, %v1041_v42 }
  0xa7   : > { %830 = vmatpush1.bf16.msra.mxu0 %v824_v43  ;;  %861 = vmatprep.mubr.bf16.mxu0 %v1119_v0 }
  0xad   : > { %v876_v28 = vpop.permute.xlu0 %875 }
  0xae   : > { %1052 = vmatmul.mubr.msk.bf16.vlgmr.msra.gmra.mrb[16].mxu0 %vm288_vm1, %v1049_v44 }
  0xeb   : > { %v383_v45 = vpop.f32.mrb[0].mxu1 }
  0xec   : > { %v385_v46 = vpop.f32.mrb[1].mxu1 }
  0xed   : > { %v387_v47 = vpop.f32.mrb[2].mxu1 }
  0xee   : > { %v388_v48 = vpop.f32.mrb[3].mxu1 }
  0xf3   : > { %v515_v49 = vpop.f32.mrb[4].mxu1 }
  0xf4   : > { %v517_v50 = vpop.f32.mrb[5].mxu1 }
  0xf5   : > { %v519_v51 = vpop.f32.mrb[6].mxu1 }
  0xf6   : > { %v520_v52 = vpop.f32.mrb[7].mxu1 }
 0x161   : > { %v333_v53 = vpop.f32.mrb[0].mxu0 }
 0x162   : > { %v384_v54 = vadd.f32 %v383_v45, %v333_v53  ;;  %v335_v55 = vpop.f32.mrb[1].mxu0 }
 0x163   : > { %v386_v56 = vadd.f32 %v385_v46, %v335_v55  ;;  %v337_v57 = vpop.f32.mrb[2].mxu0 }
 0x164   : > { %v338_v58 = vpop.f32.mrb[3].mxu0 }
 0x169   : > { %v451_v59 = vpop.f32.mrb[4].mxu0  ;;  %v653_v60 = vpop.f32.mrb[8].mxu1 }
 0x16a   : > { %v458_v61 = vadd.f32 %v451_v59, %v384_v54  ;;  %v453_v62 = vpop.f32.mrb[5].mxu0  ;;  %v655_v63 = vpop.f32.mrb[9].mxu1 }
 0x16b   : > { %v459_v0 = vadd.f32 %v453_v62, %v386_v56  ;;  %v455_v1 = vpop.f32.mrb[6].mxu0  ;;  %v657_v2 = vpop.f32.mrb[10].mxu1 }
 0x16c   : > { %v522_v3 = vadd.f32 %v515_v49, %v458_v61  ;;  %v456_v4 = vpop.f32.mrb[7].mxu0  ;;  %v658_v5 = vpop.f32.mrb[11].mxu1 }
 0x16d   : > { %v523_v6 = vadd.f32 %v517_v50, %v459_v0 }
 0x171   : > { %v584_v7 = vpop.f32.mrb[8].mxu0  ;;  %v793_v8 = vpop.f32.mrb[12].mxu1 }
 0x172   : > { %v591_v9 = vadd.f32 %v584_v7, %v522_v3  ;;  %v586_v10 = vpop.f32.mrb[9].mxu0  ;;  %v795_v11 = vpop.f32.mrb[13].mxu1 }
 0x173   : > { %v592_v12 = vadd.f32 %v586_v10, %v523_v6  ;;  %v588_v13 = vpop.f32.mrb[10].mxu0  ;;  %v797_v14 = vpop.f32.mrb[14].mxu1 }
 0x174   : > { %v660_v15 = vadd.f32 %v653_v60, %v591_v9  ;;  %v589_v16 = vpop.f32.mrb[11].mxu0  ;;  %v798_v17 = vpop.f32.mrb[15].mxu1 }
 0x175   : > { %v661_v18 = vadd.f32 %v655_v63, %v592_v12 }
 0x179   : > { %v723_v19 = vpop.f32.mrb[12].mxu0 }
 0x17a   : > { %v730_v20 = vadd.f32 %v723_v19, %v660_v15  ;;  %v725_v21 = vpop.f32.mrb[13].mxu0 }
 0x17b   : > { %v731_v22 = vadd.f32 %v725_v21, %v661_v18  ;;  %v727_v23 = vpop.f32.mrb[14].mxu0 }
 0x17c   : > { %v800_v24 = vadd.f32 %v793_v8, %v730_v20  ;;  %v728_v25 = vpop.f32.mrb[15].mxu0 }
 0x17d   : > { %v801_v26 = vadd.f32 %v795_v11, %v731_v22 }
 0x181   : > { %v863_v27 = vpop.f32.mrb[16].mxu0 }
 0x182   : > { %v870_v29 = vadd.f32 %v863_v27, %v800_v24  ;;  %v865_v30 = vpop.f32.mrb[17].mxu0 }
 0x183   : > { %v871_v31 = vadd.f32 %v865_v30, %v801_v26  ;;  %v867_v32 = vpop.f32.mrb[18].mxu0 }
 0x184   : > { %v878_v33 = vadd.f32 %v876_v28, %v870_v29  ;;  %v868_v34 = vpop.f32.mrb[19].mxu0 }
 0x185   : > { %v879_v35 = vadd.f32 %v876_v28, %v871_v31 }
 0x186   : > { %v882_v36 = vmin.f32 %v878_v33, 0.0  ;;  %vm880_vm8 = vcmp.gt.f32.partialorder %v878_v33, 0.0 }
 0x187   : > { %v883_v37 = vmin.f32 %v879_v35, 0.0  ;;  %vm881_vm9 = vcmp.gt.f32.partialorder %v879_v35, 0.0 }
 0x188   : > { %v884_v38 = vmul.f32 1.442695, %v882_v36 }
 0x189   : > { %v886_v39 = vmul.f32 1.442695, %v883_v37 }
 0x18a   : > { %1091 = vpow2.f32 %v884_v38 }
 0x18b   : > { %1093 = vpow2.f32 %v886_v39 }
 0x194   : > { %v1092_v40 = vpop.eup %1091 }
 0x195   : > { %v1094_v41 = vpop.eup %1093  ;;  %v1053_v42 = vadd.f32 -1.0, %v1092_v40 }
 0x196   : > { %v1054_v43 = vadd.f32 -1.0, %v1094_v41 }
 0x197   : > { %v890_v44 = vsel %vm880_vm8, %v878_v33, %v1053_v42 }
 0x198   : > { %v891_v45 = vsel %vm881_vm9, %v879_v35, %v1054_v43  ;;  %892 = vst [vmem:[%s267_s6] sm:$0xff] %v890_v44 }
 0x199   : > { %894 = vst.msk [vmem:[%s267_s6 + $0x8] sm:$0xff] %vm893_vm7, %v891_v45 }
 0x19a PF: > { %s14_s17 = sadd.s32 1, %s1117_s17   ;;  %s1266_s15 = smov %s1113_s16 }
 0x19b   : > { %p11_p5 = scmp.ge.s32.totalorder %s14_s17, 4   ;;  %s1267_s16 = smov %s1269_s18 }
 0x19d   :  { %13 = sbr.rel (!%p11_p5) target bundleno = 2 (0x2), region = 77 }

</bundles_post_ra>
